<compile_context>
chip_gen: v7x
topology: tpu7x:2x2x1
jax: 0.10.0
libtpu: 0.0.40
codegen_flags: <defaults>
</compile_context>

<pallas_src>
import jax
import jax.numpy as jnp
from jax.experimental import pallas as pl
from jax.experimental.pallas import tpu as pltpu


def _softplus(t):
    return jnp.log1p(jnp.exp(t))


def bnn_fused_kernel(
    x_t_ref,                                   # [D, B]  VMEM (x transposed)
    w1_mu_t_ref, w1_rho_t_ref, w1_eps_t_ref,   # [D, H]  VMEM (W1 params transposed)
    b1_mu_ref, b1_rho_ref, b1_eps_ref,         # [1, H]  VMEM
    w2_mu_ref, w2_rho_ref, w2_eps_ref,         # [1, H]  VMEM (W2 row, PyTorch layout)
    b2_params_ref,                             # [3]     SMEM: (mu, rho, eps)
    out_ref,                                   # [1, B]  VMEM (lane-dense output)
):
    # --- Reparameterized samples, fused in-kernel (EUP exp/log1p + VALU) ---
    w1_t = w1_mu_t_ref[...] + _softplus(w1_rho_t_ref[...]) * w1_eps_t_ref[...]   # [D, H]
    b1 = b1_mu_ref[...] + _softplus(b1_rho_ref[...]) * b1_eps_ref[...]           # [1, H]
    w2 = w2_mu_ref[...] + _softplus(w2_rho_ref[...]) * w2_eps_ref[...]           # [1, H]

    # b2 scalars: broadcast SMEM scalars into a [1,1] vreg, keep all math vectorized.
    b2_mu = jnp.full((1, 1), b2_params_ref[0], dtype=jnp.float32)
    b2_rho = jnp.full((1, 1), b2_params_ref[1], dtype=jnp.float32)
    b2_eps = jnp.full((1, 1), b2_params_ref[2], dtype=jnp.float32)
    b2 = b2_mu + _softplus(b2_rho) * b2_eps                                      # [1, 1]

    # --- Fold layer 2 into layer 1 (no nonlinearity in between) ---
    #   logits = x @ (W1^T @ W2^T) + (b1 . w2 + b2)
    w_eff = jnp.sum(w1_t * w2, axis=1, keepdims=True)              # [D, 1] lane reduce
    bias_eff = jnp.sum(b1 * w2, axis=1, keepdims=True) + b2        # [1, 1]

    # --- Single matvec (VPU mul + sublane reduce) + sigmoid, lane-dense store ---
    logits = jnp.sum(x_t_ref[...] * w_eff, axis=0, keepdims=True) + bias_eff     # [1, B]
    out_ref[...] = jax.nn.sigmoid(logits)


def bnn_forward(x, w1_mu, w1_rho, w1_eps, b1_mu, b1_rho, b1_eps,
                w2_mu, w2_rho, w2_eps, b2_mu, b2_rho, b2_eps):
    """Forward pass. x: [B, D]; params in PyTorch layout (W: [out, in], b: [out])."""
    B, D = x.shape
    H = w1_mu.shape[0]

    # Pure layout plumbing (elementwise sampling commutes with transpose/reshape).
    x_t = x.T                                                        # [D, B]
    w1_mu_t, w1_rho_t, w1_eps_t = w1_mu.T, w1_rho.T, w1_eps.T        # [D, H]
    b1_mu_r = b1_mu.reshape(1, H)
    b1_rho_r = b1_rho.reshape(1, H)
    b1_eps_r = b1_eps.reshape(1, H)
    b2_params = jnp.concatenate([b2_mu, b2_rho, b2_eps]).astype(jnp.float32)  # [3]

    vmem = pl.BlockSpec(memory_space=pltpu.MemorySpace.VMEM)
    smem = pl.BlockSpec(memory_space=pltpu.MemorySpace.SMEM)

    n_sample_elems = D * H + 2 * H + 1
    cost = pl.CostEstimate(
        flops=4 * n_sample_elems + 2 * D * H + 2 * H + 2 * D * B + 4 * B,
        transcendentals=2 * n_sample_elems + B,
        bytes_accessed=4 * (D * B + 3 * D * H + 6 * H + 3 + B),
    )

    out = pl.pallas_call(
        bnn_fused_kernel,
        out_shape=jax.ShapeDtypeStruct((1, B), jnp.float32),
        in_specs=[vmem] * 10 + [smem],
        out_specs=vmem,
        cost_estimate=cost,
    )(x_t,
      w1_mu_t, w1_rho_t, w1_eps_t,
      b1_mu_r, b1_rho_r, b1_eps_r,
      w2_mu, w2_rho, w2_eps,
      b2_params)

    # matches PyTorch .squeeze(dim=1)
    return out[0, :]


def make_bayes_linear_params(key, in_features, out_features):
    """Blitz-style posterior params: mu ~ N(0, 0.1), rho = -7, eps ~ N(0, 1)."""
    k_mu_w, k_eps_w, k_mu_b, k_eps_b = jax.random.split(key, 4)
    w_mu = 0.1 * jax.random.normal(k_mu_w, (out_features, in_features), jnp.float32)
    w_rho = jnp.full((out_features, in_features), -7.0, jnp.float32)
    w_eps = jax.random.normal(k_eps_w, (out_features, in_features), jnp.float32)
    b_mu = 0.1 * jax.random.normal(k_mu_b, (out_features,), jnp.float32)
    b_rho = jnp.full((out_features,), -7.0, jnp.float32)
    b_eps = jax.random.normal(k_eps_b, (out_features,), jnp.float32)
    return w_mu, w_rho, w_eps, b_mu, b_rho, b_eps


if __name__ == "__main__":
    key = jax.random.PRNGKey(0)
    k_x, k_l1, k_l2 = jax.random.split(key, 3)

    batch = 8
    input_dim = 16
    hidden_width = 32

    x = jax.random.normal(k_x, (batch, input_dim), jnp.float32)

    # BayesianLinear(input_dim, hidden_width) and BayesianLinear(hidden_width, 1)
    (w1_mu, w1_rho, w1_eps, b1_mu, b1_rho, b1_eps) = make_bayes_linear_params(
        k_l1, input_dim, hidden_width)
    (w2_mu, w2_rho, w2_eps, b2_mu, b2_rho, b2_eps) = make_bayes_linear_params(
        k_l2, hidden_width, 1)

    out = bnn_forward(x, w1_mu, w1_rho, w1_eps, b1_mu, b1_rho, b1_eps,
                      w2_mu, w2_rho, w2_eps, b2_mu, b2_rho, b2_eps)
    out = jax.block_until_ready(out)

    # Pure-JAX reference: explicit sampling + two explicit (un-folded) matmuls.
    w1 = w1_mu + _softplus(w1_rho) * w1_eps
    b1 = b1_mu + _softplus(b1_rho) * b1_eps
    w2 = w2_mu + _softplus(w2_rho) * w2_eps
    b2 = b2_mu + _softplus(b2_rho) * b2_eps
    ref = jax.nn.sigmoid((x @ w1.T + b1) @ w2.T + b2)[:, 0]

    assert out.shape == (batch,)
    assert jnp.allclose(out, ref, atol=1e-5, rtol=1e-5), (out, ref)

    print("KERNEL_OK")
</pallas_src>

<mosaic_0001>
module attributes {stable_mosaic.version = 11 : i64} {
  func.func @bnn_fused_kernel(%arg0: memref<16x8xf32, #tpu.memory_space<vmem>>, %arg1: memref<16x32xf32, #tpu.memory_space<vmem>>, %arg2: memref<16x32xf32, #tpu.memory_space<vmem>>, %arg3: memref<16x32xf32, #tpu.memory_space<vmem>>, %arg4: memref<1x32xf32, #tpu.memory_space<vmem>>, %arg5: memref<1x32xf32, #tpu.memory_space<vmem>>, %arg6: memref<1x32xf32, #tpu.memory_space<vmem>>, %arg7: memref<1x32xf32, #tpu.memory_space<vmem>>, %arg8: memref<1x32xf32, #tpu.memory_space<vmem>>, %arg9: memref<1x32xf32, #tpu.memory_space<vmem>>, %arg10: memref<3xf32, #tpu.memory_space<smem>>, %arg11: memref<1x8xf32, #tpu.memory_space<vmem>>) attributes {dimension_semantics = [], scalar_prefetch = 0 : i64, scratch_operands = 0 : i64, tpu.core_type = #tpu.core_type<tc>} {
    %c0 = arith.constant 0 : index
    %c0_0 = arith.constant 0 : index
    %0 = vector.load %arg1[%c0, %c0_0] : memref<16x32xf32, #tpu.memory_space<vmem>>, vector<16x32xf32>
    %c0_1 = arith.constant 0 : index
    %c0_2 = arith.constant 0 : index
    %1 = vector.load %arg2[%c0_1, %c0_2] : memref<16x32xf32, #tpu.memory_space<vmem>>, vector<16x32xf32>
    %2 = math.exp %1 : vector<16x32xf32>
    %3 = math.log1p %2 : vector<16x32xf32>
    %c0_3 = arith.constant 0 : index
    %c0_4 = arith.constant 0 : index
    %4 = vector.load %arg3[%c0_3, %c0_4] : memref<16x32xf32, #tpu.memory_space<vmem>>, vector<16x32xf32>
    %5 = arith.mulf %3, %4 : vector<16x32xf32>
    %6 = arith.addf %0, %5 : vector<16x32xf32>
    %c0_5 = arith.constant 0 : index
    %c0_6 = arith.constant 0 : index
    %7 = vector.load %arg4[%c0_5, %c0_6] : memref<1x32xf32, #tpu.memory_space<vmem>>, vector<1x32xf32>
    %c0_7 = arith.constant 0 : index
    %c0_8 = arith.constant 0 : index
    %8 = vector.load %arg5[%c0_7, %c0_8] : memref<1x32xf32, #tpu.memory_space<vmem>>, vector<1x32xf32>
    %9 = math.exp %8 : vector<1x32xf32>
    %10 = math.log1p %9 : vector<1x32xf32>
    %c0_9 = arith.constant 0 : index
    %c0_10 = arith.constant 0 : index
    %11 = vector.load %arg6[%c0_9, %c0_10] : memref<1x32xf32, #tpu.memory_space<vmem>>, vector<1x32xf32>
    %12 = arith.mulf %10, %11 : vector<1x32xf32>
    %13 = arith.addf %7, %12 : vector<1x32xf32>
    %c0_11 = arith.constant 0 : index
    %c0_12 = arith.constant 0 : index
    %14 = vector.load %arg7[%c0_11, %c0_12] : memref<1x32xf32, #tpu.memory_space<vmem>>, vector<1x32xf32>
    %c0_13 = arith.constant 0 : index
    %c0_14 = arith.constant 0 : index
    %15 = vector.load %arg8[%c0_13, %c0_14] : memref<1x32xf32, #tpu.memory_space<vmem>>, vector<1x32xf32>
    %16 = math.exp %15 : vector<1x32xf32>
    %17 = math.log1p %16 : vector<1x32xf32>
    %c0_15 = arith.constant 0 : index
    %c0_16 = arith.constant 0 : index
    %18 = vector.load %arg9[%c0_15, %c0_16] : memref<1x32xf32, #tpu.memory_space<vmem>>, vector<1x32xf32>
    %19 = arith.mulf %17, %18 : vector<1x32xf32>
    %20 = arith.addf %14, %19 : vector<1x32xf32>
    %c0_17 = arith.constant 0 : index
    %21 = memref.load %arg10[%c0_17] : memref<3xf32, #tpu.memory_space<smem>>
    %22 = vector.broadcast %21 : f32 to vector<1x1xf32>
    %c1 = arith.constant 1 : index
    %23 = memref.load %arg10[%c1] : memref<3xf32, #tpu.memory_space<smem>>
    %24 = vector.broadcast %23 : f32 to vector<1x1xf32>
    %c2 = arith.constant 2 : index
    %25 = memref.load %arg10[%c2] : memref<3xf32, #tpu.memory_space<smem>>
    %26 = vector.broadcast %25 : f32 to vector<1x1xf32>
    %27 = math.exp %24 : vector<1x1xf32>
    %28 = math.log1p %27 : vector<1x1xf32>
    %29 = arith.mulf %28, %26 : vector<1x1xf32>
    %30 = arith.addf %22, %29 : vector<1x1xf32>
    %31 = vector.broadcast %20 : vector<1x32xf32> to vector<16x32xf32>
    %32 = arith.mulf %6, %31 : vector<16x32xf32>
    %cst = arith.constant dense<0.000000e+00> : vector<16xf32>
    %33 = vector.multi_reduction <add>, %32, %cst [1] : vector<16x32xf32> to vector<16xf32>
    %34 = vector.shape_cast %33 : vector<16xf32> to vector<16x1xf32>
    %35 = arith.mulf %13, %20 : vector<1x32xf32>
    %cst_18 = arith.constant dense<0.000000e+00> : vector<1xf32>
    %36 = vector.multi_reduction <add>, %35, %cst_18 [1] : vector<1x32xf32> to vector<1xf32>
    %37 = vector.shape_cast %36 : vector<1xf32> to vector<1x1xf32>
    %38 = arith.addf %37, %30 : vector<1x1xf32>
    %c0_19 = arith.constant 0 : index
    %c0_20 = arith.constant 0 : index
    %39 = vector.load %arg0[%c0_19, %c0_20] : memref<16x8xf32, #tpu.memory_space<vmem>>, vector<16x8xf32>
    %40 = vector.broadcast %34 : vector<16x1xf32> to vector<16x8xf32>
    %41 = arith.mulf %39, %40 : vector<16x8xf32>
    %cst_21 = arith.constant dense<0.000000e+00> : vector<8xf32>
    %42 = vector.multi_reduction <add>, %41, %cst_21 [0] : vector<16x8xf32> to vector<8xf32>
    %43 = vector.shape_cast %42 : vector<8xf32> to vector<1x8xf32>
    %44 = vector.broadcast %38 : vector<1x1xf32> to vector<1x8xf32>
    %45 = arith.addf %43, %44 : vector<1x8xf32>
    %46 = arith.negf %45 : vector<1x8xf32>
    %47 = math.exp %46 : vector<1x8xf32>
    %cst_22 = arith.constant 1.000000e+00 : f32
    %48 = vector.broadcast %cst_22 : f32 to vector<1x8xf32>
    %49 = arith.addf %48, %47 : vector<1x8xf32>
    %50 = arith.divf %48, %49 : vector<1x8xf32>
    %c0_23 = arith.constant 0 : index
    %c0_24 = arith.constant 0 : index
    %51 = vector.load %arg11[%c0_23, %c0_24] : memref<1x8xf32, #tpu.memory_space<vmem>>, vector<1x8xf32>
    tpu.vector_store %arg11[%c0_23, %c0_24], %50 {strides = array<i32>} : memref<1x8xf32, #tpu.memory_space<vmem>>, vector<1x8xf32>,
    return
  }
}

</mosaic_0001>

<bundles_post_ra>
// kernel: tpu_custom_call.1
= control target key start
LH: loop header
LB: loop body
LE: loop exit
PB: predicated region body
PF: predicated region fallthrough
CT: control target
= control target key end

     0   :  { %16 = vsyncpa [#allocation3], 0  ;;  %s449_s0 = inlined_call_operand.vmem [shape: f32[16,8], index: 0, kind: input, shape index: {}]   ;;  %s450_s1 = inlined_call_operand.vmem [shape: f32[16,32], index: 1, kind: input, shape index: {}]   ;;  %s451_s2 = inlined_call_operand.hbm [shape: f32[16,32], index: 2, kind: input, shape index: {}]   ;;  %s452_s3 = inlined_call_operand.vmem [shape: f32[16,32], index: 3, kind: input, shape index: {}]   ;;  %s453_s4 = inlined_call_operand.vmem [shape: f32[1,32], index: 4, kind: input, shape index: {}]   ;;  %s454_s5 = inlined_call_operand.vmem [shape: f32[1,32], index: 5, kind: input, shape index: {}]   ;;  %s455_s6 = inlined_call_operand.vmem [shape: f32[1,32], index: 6, kind: input, shape index: {}]   ;;  %s456_s7 = inlined_call_operand.vmem [shape: f32[1,32], index: 7, kind: input, shape index: {}]   ;;  %s457_s8 = inlined_call_operand.vmem [shape: f32[1,32], index: 8, kind: input, shape index: {}]   ;;  %s458_s9 = inlined_call_operand.vmem [shape: f32[1,32], index: 9, kind: input, shape index: {}]   ;;  %s459_s10 = inlined_call_operand.vmem [shape: f32[3], index: 10, kind: input, shape index: {}]   ;;  %s460_s11 = inlined_call_operand.hbm [shape: f32[1,8], index: 11, kind: output, shape index: {}]  }
   0x1   :  { %17 = vsyncpa [#allocation5], 0 }
   0x2   :  { %18 = vsyncpa [#allocation4], 0  ;;  %s303_s17 = smov [#allocation2]   ;;  %s55_s21 = sshll.u32 %s459_s10, 4  ;;  %s56_s21 = int_to_ptr.vmem [resolvable:$true] %s55_s21 }
   0x3   :  { %s28_s18 = sshll.u32 %s303_s17, 4  ;;  %s241_s24 = scalar_lea.hbm %s451_s2, 256  ;;  %s29_s18 = int_to_ptr.vmem [resolvable:$true] %s28_s18 }
   0x4   :  { %p242_p0 = scmp.ne.s32.totalorder %s451_s2, %s241_s24  ;;  %p245_p1 = scmp.lt.u32.totalorder %s241_s24, %s451_s2 }
   0x6   :  { %p247_p2 = pnand %p245_p1, %p242_p0 }
   0x8   :  { %250 = shalt.err (!%p247_p2)
}
   0x9   :  { %s251_s29 = scalar_lea.vmem %s29_s18, 256  ;;  %p256_p4 = scmp.lt.s32.totalorder %s29_s18, %s29_s18 }
   0xa   :  { %p252_p3 = scmp.ne.s32.totalorder %s29_s18, %s251_s29  ;;  %p257_p5 = scmp.lt.s32.totalorder %s251_s29, %s251_s29 }
   0xc   :  { %p258_p6 = por %p257_p5, %p256_p4 }
   0xe   :  { %p259_p7 = pnand %p258_p6, %p252_p3 }
  0x10   :  { %262 = shalt.err (!%p259_p7)
}
  0x11   :  { %s304_s10 = smov 128   ;;  %s305_s30 = smov 8  }
  0x12   :  { %34 = dma.hbm_to_vmem [thread:$0]  %s451_s2, 256, %s29_s18, [#allocation3], %s304_s10, %s304_s10, %s305_s30  }
  0x13   :  { %s263_s14 = scalar_lea.vmem %s56_s21, 16  ;;  %p268_p9 = scmp.lt.s32.totalorder %s56_s21, %s56_s21 }
  0x14   :  { %p264_p8 = scmp.ne.s32.totalorder %s56_s21, %s263_s14  ;;  %p269_p10 = scmp.lt.s32.totalorder %s263_s14, %s263_s14 }
  0x16   :  { %p270_p11 = por %p269_p10, %p268_p9 }
  0x18   :  { %p271_p12 = pnand %p270_p11, %p264_p8 }
  0x1a   :  { %274 = shalt.err (!%p271_p12)
}
  0x1b   :  { %s306_s15 = smov [#allocation6]  }
  0x1c   :  { %58 = dma.vmem_to_smem %s56_s21, 16, %s306_s15, [#allocation5]  }
  0x1d   :  { %297 = dma.done.wait [#allocation3], 256  }
  0x1e   :  { %298 = vsyncadd [#allocation3], 4294967040 }
  0x1f   :  { %299 = dma.done.wait [#allocation5], 16  }
  0x20   :  { %300 = vsyncadd [#allocation5], 4294967280 }
  0x21   :  { %65 = sfence }
  0x22   :  { %v68_v0 = vld [vmem:[#allocation2] sm:$0xff]  ;;  %v115_v2 = vld [vmem:[%s457_s8] sm:$0x1]  ;;  %v69_v4 = vld [vmem:[#allocation2 + $0x8] sm:$0xff]  ;;  %v150_v24 = vlaneseq  ;;  %vm157_vm4 = vcmask 261120   ;;  %vm165_vm5 = vcmask 253952  }
  0x23   :  { %v70_v1 = vmul.f32 1.442695, %v68_v0  ;;  %v116_v3 = vmul.f32 1.442695, %v115_v2  ;;  %v72_v5 = vmul.f32 1.442695, %v69_v4 }
  0x24   :  { %v99_v6 = vld [vmem:[%s454_s5] sm:$0x1]  ;;  %v151_v37 = vshrl.u32 %v150_v24, 7  ;;  %v93_v51 = vld [vmem:[%s452_s3 + $0x8] sm:$0xff]  ;;  %s130_s13 = sld [smem:[#allocation6]]  ;;  %vm174_vm6 = vcmask 64512  }
  0x25   :  { %217 = vpow2.f32 %v70_v1  ;;  %v100_v7 = vmul.f32 1.442695, %v99_v6  ;;  %v92_v35 = vld [vmem:[%s452_s3] sm:$0xff]  ;;  %v67_v56 = vld [vmem:[%s450_s1 + $0x8] sm:$0xff]  ;;  %vm191_vm8 = vcmask 57344  }
  0x26   :  { %219 = vpow2.f32 %v116_v3  ;;  %v127_v39 = vld [vmem:[%s458_s9] sm:$0x1]  ;;  %v152_v53 = vsub.s32 0, %v151_v37 }
  0x27   :  { %221 = vpow2.f32 %v72_v5  ;;  %v114_v43 = vld [vmem:[%s456_s7] sm:$0x1] }
  0x28   :  { %223 = vpow2.f32 %v100_v7  ;;  %v66_v47 = vld [vmem:[%s450_s1] sm:$0xff]  ;;  %s209_s1 = sld [smem:[#allocation6 + $0x1]] }
  0x29   :  { %v111_v55 = vld [vmem:[%s455_s6] sm:$0x1] }
  0x2a   :  { %v98_v61 = vld [vmem:[%s453_s4] sm:$0x1]  ;;  %s210_s4 = sld [smem:[#allocation6 + $0x2]] }
  0x2f   :  { %v218_v8 = vpop.eup %217 }
  0x30   :  { %v220_v9 = vpop.eup %219  ;;  %v74_v10 = vadd.f32 1.0, %v218_v8  ;;  %v77_v14 = vmul.f32 -0.5, %v218_v8  ;;  %v80_v21 = vand.u32 2147483647, %v218_v8 }
  0x31   :  { %v118_v11 = vadd.f32 1.0, %v220_v9  ;;  %v222_v12 = vpop.eup %221  ;;  %v121_v16 = vmul.f32 -0.5, %v220_v9  ;;  %v124_v23 = vand.u32 2147483647, %v220_v9 }
  0x32   :  { %225 = vlog2.f32 %v74_v10  ;;  %v224_v13 = vpop.eup %223  ;;  %v83_v15 = vadd.f32 1.0, %v222_v12  ;;  %v86_v18 = vmul.f32 -0.5, %v222_v12  ;;  %v78_v19 = vadd.f32 1.0, %v77_v14 }
  0x33   :  { %227 = vlog2.f32 %v118_v11  ;;  %v102_v17 = vadd.f32 1.0, %v224_v13  ;;  %v105_v20 = vmul.f32 -0.5, %v224_v13  ;;  %v122_v22 = vadd.f32 1.0, %v121_v16  ;;  %v170_v16 = vld [vmem:[%s449_s0] sm:$0xff] }
  0x34   :  { %229 = vlog2.f32 %v83_v15  ;;  %v87_v25 = vadd.f32 1.0, %v86_v18  ;;  %v79_v26 = vmul.f32 %v218_v8, %v78_v19  ;;  %v89_v27 = vand.u32 2147483647, %v222_v12  ;;  %v171_v19 = vld [vmem:[%s449_s0 + $0x8] sm:$0xff]  ;;  %s307_s0 = smov [#allocation7]  }
  0x35   :  { %231 = vlog2.f32 %v102_v17  ;;  %v106_v28 = vadd.f32 1.0, %v105_v20  ;;  %vm389_vm0 = vcmp.lt.f32.partialorder %v80_v21, 0.0004427343  ;;  %v123_v31 = vmul.f32 %v220_v9, %v122_v22  ;;  %s199_s14 = sshll.u32 %s307_s0, 4  ;;  %s200_s14 = int_to_ptr.vmem [resolvable:$true] %s199_s14 }
  0x36   :  { %v108_v32 = vand.u32 2147483647, %v224_v13  ;;  %vm396_vm1 = vcmp.lt.f32.partialorder %v124_v23, 0.0004427343  ;;  %v88_v40 = vmul.f32 %v222_v12, %v87_v25  ;;  %vm408_vm2 = vcmp.lt.f32.partialorder %v89_v27, 0.0004427343  ;;  %p280_p0 = scmp.lt.s32.totalorder %s200_s14, %s200_s14 }
  0x37   :  { %v107_v45 = vmul.f32 %v224_v13, %v106_v28  ;;  %v133_v9 = vstv %s209_s1  ;;  %v135_v27 = vstv %s210_s4  ;;  %s275_s15 = scalar_lea.vmem %s200_s14, 16  ;;  %s279_s16 = scalar_lea.vmem %s200_s14, 32 }
  0x38   :  { %vm109_vm3 = vcmp.lt.f32.partialorder %v108_v32, 0.0004427343  ;;  %v136_v10 = vmul.f32 1.442695, %v133_v9  ;;  %v131_v32 = vstv %s130_s13  ;;  %p276_p13 = scmp.ne.s32.totalorder %s200_s14, %s275_s15  ;;  %p281_p1 = scmp.lt.s32.totalorder %s279_s16, %s275_s15 }
  0x3a   :  { %233 = vpow2.f32 %v136_v10  ;;  %p282_p2 = por %p281_p1, %p280_p0 }
  0x3c   :  { %v226_v29 = vpop.eup %225  ;;  %p283_p3 = pnand %p282_p2, %p276_p13 }
  0x3d   :  { %v228_v33 = vpop.eup %227  ;;  %v76_v34 = vmul.f32 0.6931472, %v226_v29 }
  0x3e   :  { %v120_v38 = vmul.f32 0.6931472, %v228_v33  ;;  %v230_v41 = vpop.eup %229 }
  0x3f   :  { %v82_v42 = vsel %vm389_vm0, %v79_v26, %v76_v34  ;;  %v232_v46 = vpop.eup %231  ;;  %v85_v50 = vmul.f32 0.6931472, %v230_v41 }
  0x40   :  { %v94_v48 = vmul.f32 %v92_v35, %v82_v42  ;;  %v126_v49 = vsel %vm396_vm1, %v123_v31, %v120_v38  ;;  %v104_v54 = vmul.f32 0.6931472, %v232_v46 }
  0x41   :  { %v128_v52 = vmul.f32 %v127_v39, %v126_v49  ;;  %v91_v57 = vsel %vm408_vm2, %v88_v40, %v85_v50 }
  0x42   :  { %v96_v58 = vadd.f32 %v94_v48, %v66_v47  ;;  %v95_v60 = vmul.f32 %v93_v51, %v91_v57  ;;  %v110_v62 = vsel %vm109_vm3, %v107_v45, %v104_v54 }
  0x43   :  { %v129_v59 = vadd.f32 %v128_v52, %v114_v43  ;;  %v112_v63 = vmul.f32 %v111_v55, %v110_v62 }
  0x44   :  { %v97_v1 = vadd.f32 %v95_v60, %v67_v56  ;;  %v234_v11 = vpop.eup %233 }
  0x45   :  { %v153_v0 = vrot.slane %v129_v59, %v152_v53  ;;  %v113_v2 = vadd.f32 %v112_v63, %v98_v61  ;;  %v138_v12 = vadd.f32 1.0, %v234_v11  ;;  %v141_v13 = vmul.f32 -0.5, %v234_v11 }
  0x46   :  { %v144_v18 = vand.u32 2147483647, %v234_v11 }
  0x47   :  { %v155_v3 = vmul.f32 %v153_v0, %v96_v58  ;;  %v156_v4 = vmul.f32 %v153_v0, %v97_v1  ;;  %v164_v5 = vmul.f32 %v129_v59, %v113_v2  ;;  %235 = vlog2.f32 %v138_v12 }
  0x48   :  { %v142_v14 = vadd.f32 1.0, %v141_v13  ;;  %vm145_vm7 = vcmp.lt.f32.partialorder %v144_v18, 0.0004427343 }
  0x49   :  { %v158_v6 = vsel %vm157_vm4, %v155_v3, 0.0  ;;  %v166_v7 = vsel %vm165_vm5, %v164_v5, 0.0  ;;  %v161_v8 = vsel %vm157_vm4, %v156_v4, 0.0 }
  0x4a   :  { %159 = vadd.xlane.f32.xlu0 %v158_v6  ;;  %167 = vadd.xlane.f32.xlu1 %v166_v7  ;;  %v143_v22 = vmul.f32 %v234_v11, %v142_v14 }
  0x4e   :  { %162 = vadd.xlane.f32.xlu0 %v161_v8 }
  0x51   :  { %v236_v15 = vpop.eup %235 }
  0x52   :  { %v140_v21 = vmul.f32 0.6931472, %v236_v15 }
  0x54   :  { %v146_v28 = vsel %vm145_vm7, %v143_v22, %v140_v21 }
  0x55   :  { %v147_v31 = vmul.f32 %v146_v28, %v135_v27 }
  0x57   :  { %v148_v35 = vadd.f32 %v147_v31, %v131_v32 }
  0xd7   :  { %v160_v17 = vpop.xlane.xlu0 %159  ;;  %v168_v36 = vpop.xlane.xlu1 %167 }
  0xd8   :  { %v172_v20 = vmul.f32 %v170_v16, %v160_v17  ;;  %v169_v38 = vadd.f32 %v168_v36, %v148_v35 }
  0xda   :  { %v175_v25 = vsel %vm174_vm6, %v172_v20, 0.0 }
  0xdb   :  { %v163_v23 = vpop.xlane.xlu0 %162 }
  0xdc   :  { %v173_v24 = vmul.f32 %v171_v19, %v163_v23 }
  0xde   :  { %v176_v26 = vsel %vm174_vm6, %v173_v24, 0.0 }
  0xdf   :  { %v177_v29 = vadd.f32 %v176_v26, %v175_v25 }
  0xe1   :  { %v178_v30 = vrot.slane %v177_v29, 4 }
  0xe3   :  { %v179_v33 = vadd.f32 %v178_v30, %v177_v29 }
  0xe5   :  { %v180_v34 = vrot.slane %v179_v33, 2 }
  0xe7   :  { %v181_v37 = vadd.f32 %v180_v34, %v179_v33 }
  0xe9   :  { %v182_v39 = vrot.slane %v181_v37, 1 }
  0xeb   :  { %v183_v40 = vadd.f32 %v182_v39, %v181_v37 }
  0xed   :  { %v184_v41 = vadd.f32 %v183_v40, %v169_v38 }
  0xef   :  { %v211_v42 = vmul.f32 -1.442695, %v184_v41 }
  0xf1   :  { %237 = vpow2.f32 %v211_v42 }
  0xfb   :  { %v238_v43 = vpop.eup %237 }
  0xfc   :  { %v188_v44 = vadd.f32 1.0, %v238_v43 }
  0xfe   :  { %239 = vrcp.f32 %v188_v44 }
 0x108   :  { %v240_v45 = vpop.eup %239 }
 0x109   :  { %192 = vst.msk [vmem:[#allocation7] sm:$0x1] %vm191_vm8, %v240_v45 }
 0x10a   :  { %286 = shalt.err (!%p283_p3)
}
 0x10b   :  { %s287_s18 = scalar_lea.hbm %s460_s11, 16 }
 0x10c   :  { %p288_p4 = scmp.ne.s32.totalorder %s460_s11, %s287_s18  ;;  %p291_p5 = scmp.lt.u32.totalorder %s287_s18, %s460_s11 }
 0x10e   :  { %p293_p6 = pnand %p291_p5, %p288_p4 }
 0x110   :  { %296 = shalt.err (!%p293_p6)
}
 0x111   :  { %202 = dma.vmem_to_hbm [thread:$0]  %s200_s14, 16, %s460_s11, [#allocation4]  }
 0x112   :  { %301 = dma.done.wait [#allocation4], 16  }
 0x113   :  { %302 = vsyncadd [#allocation4], 4294967280 }
 0x114   :  { %206 = vsyncpa [#allocation3], 1 }
 0x115   :  { %207 = vsyncpa [#allocation4], 1 }
 0x116   :  { %208 = vsyncpa [#allocation5], 1 }

</bundles_post_ra>
